<compile_context>
chip_gen: v7x
topology: tpu7x:2x2x1
jax: 0.10.0
libtpu: 0.0.40
codegen_flags: <defaults>
</compile_context>

<pallas_src>
import math

import jax
import jax.numpy as jnp
from jax import lax
from jax.experimental import pallas as pl
from jax.experimental.pallas import tpu as pltpu


def _round_up(n, m):
    return ((n + m - 1) // m) * m


def _mlp_kernel(x_ref, w1t_ref, b1c_ref, w2t_ref, b2c_ref, w3c_ref, b3_ref, o_ref):
    """One batch tile, feature-major: fc1 -> tanh -> fc2 -> tanh -> fc3."""
    # In-kernel cast to the MXU dtype (x is streamed from HBM as f32).
    xb = x_ref[...].astype(w1t_ref.dtype)                       # (tb, I)

    # fc1 directly in feature-major layout: h1t[h, b] = sum_i w1t[h, i] * x[b, i].
    # Contract-last-with-last (A @ B^T form, as in flash attention's q.k^T), so
    # no explicit transpose of the big activation tile is needed.
    h1t = lax.dot_general(
        w1t_ref[...], xb,
        dimension_numbers=(((1,), (1,)), ((), ())),
        preferred_element_type=jnp.float32)                     # (H, tb) f32
    # Bias add + tanh lane-dense (batch on the 128-lane axis); kept f32 on the
    # VPU/EUP (v5e has no bf16 VPU/EUP).
    h1t = jnp.tanh(h1t + b1c_ref[...])
    # d1: identity (eval mode)

    # fc2 feature-major on the MXU: (H, H) @ (H, tb).
    h2t = jnp.dot(w2t_ref[...], h1t.astype(w2t_ref.dtype),
                  preferred_element_type=jnp.float32)           # (H, tb) f32
    h2t = jnp.tanh(h2t + b2c_ref[...])
    # d2: identity (eval mode)

    # fc3 has a single output feature: weighted sublane reduce (VPU + XLU) plus a
    # scalar SMEM bias, producing a lane-dense (1, tb) output row.
    out = jnp.sum(h2t * w3c_ref[...], axis=0, keepdims=True) + b3_ref[0, 0]
    o_ref[...] = out.astype(o_ref.dtype)


def prepare_params(params, *, use_bf16=True):
    """One-time reorientation / casting of the (tiny) weights for the kernel.

    Input params follow the (in, out) convention (x @ w + b).  Returns
    feature-major operands:
      w1t (H, I) mxu_dtype, b1c (H, 1) f32, w2t (H, H) mxu_dtype, b2c (H, 1) f32,
      w3c (H, 1) f32, b3s (1, 1) f32 (SMEM scalar).
    """
    w1, b1, w2, b2, w3, b3 = params
    H = w1.shape[1]
    mxu_dtype = jnp.bfloat16 if use_bf16 else jnp.float32
    return (
        jnp.asarray(w1).T.astype(mxu_dtype),                # (H, I)
        jnp.asarray(b1).reshape(H, 1).astype(jnp.float32),  # (H, 1)
        jnp.asarray(w2).T.astype(mxu_dtype),                # (H_out, H_in)
        jnp.asarray(b2).reshape(H, 1).astype(jnp.float32),  # (H, 1)
        jnp.asarray(w3).reshape(H, 1).astype(jnp.float32),  # (H, 1)
        jnp.asarray(b3).reshape(1, 1).astype(jnp.float32),  # (1, 1) SMEM scalar
    )


def classifier_forward(x, prepared, *, tile_b=8192):
    """x: (B, num_inputs) f32; prepared: output of prepare_params.  Returns (B, 1) f32."""
    w1t, b1c, w2t, b2c, w3c, b3s = prepared
    B, num_inputs = x.shape
    H = w1t.shape[0]

    # Batch tile: multiple of 8 (sublane), rounded to 128 when large (lane-dense,
    # unmasked output stores), at least 2 grid steps when B allows (v7x megacore),
    # capped so a double-buffered f32 x tile stays ~2 MiB of VMEM.
    tb = max(8, _round_up(pl.cdiv(B, 2), 8))
    if tb >= 128:
        tb = _round_up(tb, 128)
    tb = min(tb, tile_b)
    num_tiles = pl.cdiv(B, tb)

    out = pl.pallas_call(
        _mlp_kernel,
        out_shape=jax.ShapeDtypeStruct((num_tiles, 1, tb), jnp.float32),
        grid=(num_tiles,),
        in_specs=[
            pl.BlockSpec((tb, num_inputs), lambda i: (i, 0)),   # x: tiled over batch
            pl.BlockSpec((H, num_inputs), lambda i: (0, 0)),    # w1^T: VMEM-resident
            pl.BlockSpec((H, 1), lambda i: (0, 0)),             # b1 column
            pl.BlockSpec((H, H), lambda i: (0, 0)),             # w2^T
            pl.BlockSpec((H, 1), lambda i: (0, 0)),             # b2 column
            pl.BlockSpec((H, 1), lambda i: (0, 0)),             # w3 column
            pl.BlockSpec(memory_space=pltpu.MemorySpace.SMEM),  # b3 scalar
        ],
        # Lane-dense (1, tb) row per grid step; leading tile dim squeezed.
        out_specs=pl.BlockSpec((None, 1, tb), lambda i: (i, 0, 0)),
        compiler_params=pltpu.CompilerParams(
            dimension_semantics=("parallel",)),
    )(x, w1t, b1c, w2t, b2c, w3c, b3s)

    # (num_tiles, 1, tb) -> (B, 1); rows beyond B (partial last tile) are dropped.
    return out.reshape(num_tiles * tb, 1)[:B]


def init_params(key, num_inputs, hidden_dim):
    """Deterministic init mirroring nn.Linear defaults (+ fc3 scaling)."""
    ks = jax.random.split(key, 6)

    def linear_init(kw, kb, fan_in, fan_out):
        bound = 1.0 / math.sqrt(fan_in)
        # stored as (in, out): transpose of PyTorch's (out, in)
        w = jax.random.uniform(kw, (fan_in, fan_out), jnp.float32, -bound, bound)
        b = jax.random.uniform(kb, (1, fan_out), jnp.float32, -bound, bound)
        return w, b

    w1, b1 = linear_init(ks[0], ks[1], num_inputs, hidden_dim)
    w2, b2 = linear_init(ks[2], ks[3], hidden_dim, hidden_dim)
    w3, b3 = linear_init(ks[4], ks[5], hidden_dim, 1)
    # fc3.weight *= 0.1 ; fc3.bias *= 0.0
    w3 = w3 * 0.1
    b3 = b3 * 0.0
    return (w1, b1, w2, b2, w3, b3)


if __name__ == "__main__":
    num_inputs, hidden_dim = 32, 32

    key = jax.random.PRNGKey(0)
    kx, kp = jax.random.split(key)
    params = init_params(kp, num_inputs, hidden_dim)
    w1, b1, w2, b2, w3, b3 = params

    def ref_forward(x, cast_bf16):
        if cast_bf16:
            xc = x.astype(jnp.bfloat16).astype(jnp.float32)
            w1c = w1.astype(jnp.bfloat16).astype(jnp.float32)
            w2c = w2.astype(jnp.bfloat16).astype(jnp.float32)
        else:
            xc, w1c, w2c = x, w1, w2
        prec = jax.lax.Precision.HIGHEST
        h = jnp.tanh(jnp.dot(xc, w1c, precision=prec) + b1)
        h = jnp.tanh(jnp.dot(h, w2c, precision=prec) + b2)
        return jnp.dot(h, w3, precision=prec) + b3

    fwd = jax.jit(classifier_forward, static_argnames=("tile_b",))

    # bf16 MXU path: B=256 -> tb=128, grid=(2,) (both TensorCores on v7x).
    prep_bf16 = prepare_params(params, use_bf16=True)
    x_a = jax.random.normal(kx, (256, num_inputs), jnp.float32)
    out_a = fwd(x_a, prep_bf16)
    jax.block_until_ready(out_a)
    assert out_a.shape == (256, 1)
    assert jnp.allclose(out_a, ref_forward(x_a, True), atol=1e-4, rtol=1e-4)

    # f32 path, batch not a multiple of the tile: exercises the partial last
    # x block without any wrapper-side padding (B=100, tb=56, grid=(2,)).
    prep_f32 = prepare_params(params, use_bf16=False)
    x_b = jax.random.normal(jax.random.fold_in(kx, 1), (100, num_inputs), jnp.float32)
    out_b = fwd(x_b, prep_f32)
    jax.block_until_ready(out_b)
    assert out_b.shape == (100, 1)
    assert bool(jnp.all(jnp.isfinite(out_b)))
    assert jnp.allclose(out_b, ref_forward(x_b, False), atol=2e-3, rtol=2e-3)

    # Tiny batch: single (8, I) block.
    x_c = jax.random.normal(jax.random.fold_in(kx, 2), (8, num_inputs), jnp.float32)
    out_c = fwd(x_c, prep_f32)
    jax.block_until_ready(out_c)
    assert out_c.shape == (8, 1)
    assert jnp.allclose(out_c, ref_forward(x_c, False), atol=2e-3, rtol=2e-3)

    print("KERNEL_OK")
</pallas_src>

<mosaic_0001>
module attributes {stable_mosaic.version = 11 : i64} {
  func.func @_mlp_kernel(%arg0: i32, %arg1: memref<128x32xf32, #tpu.memory_space<vmem>>, %arg2: memref<32x32xbf16, #tpu.memory_space<vmem>>, %arg3: memref<32x1xf32, #tpu.memory_space<vmem>>, %arg4: memref<32x32xbf16, #tpu.memory_space<vmem>>, %arg5: memref<32x1xf32, #tpu.memory_space<vmem>>, %arg6: memref<32x1xf32, #tpu.memory_space<vmem>>, %arg7: memref<1x1xf32, #tpu.memory_space<smem>>, %arg8: memref<1x1x128xf32, #tpu.memory_space<vmem>>) attributes {dimension_semantics = [#tpu.dimension_semantics<parallel>], iteration_bounds = array<i64: 2>, scalar_prefetch = 0 : i64, scratch_operands = 0 : i64, tpu.core_type = #tpu.core_type<tc>, window_params = [{transform_indices = @transform_0, window_bounds = array<i64: 128, 32>}, {pipeline_mode = #tpu.pipeline_mode<synchronous>, transform_indices = @transform_1, window_bounds = array<i64: 32, 32>}, {pipeline_mode = #tpu.pipeline_mode<synchronous>, transform_indices = @transform_2, window_bounds = array<i64: 32, 1>}, {pipeline_mode = #tpu.pipeline_mode<synchronous>, transform_indices = @transform_3, window_bounds = array<i64: 32, 32>}, {pipeline_mode = #tpu.pipeline_mode<synchronous>, transform_indices = @transform_4, window_bounds = array<i64: 32, 1>}, {pipeline_mode = #tpu.pipeline_mode<synchronous>, transform_indices = @transform_5, window_bounds = array<i64: 32, 1>}, {transform_indices = @transform_6, window_bounds = array<i64: 1, 1>}, {transform_indices = @transform_7, window_bounds = array<i64: 1, 1, 128>}]} {
    %c0 = arith.constant 0 : index
    %c0_0 = arith.constant 0 : index
    %0 = vector.load %arg1[%c0, %c0_0] : memref<128x32xf32, #tpu.memory_space<vmem>>, vector<128x32xf32>
    %1 = arith.truncf %0 : vector<128x32xf32> to vector<128x32xbf16>
    %c0_1 = arith.constant 0 : index
    %c0_2 = arith.constant 0 : index
    %2 = vector.load %arg2[%c0_1, %c0_2] : memref<32x32xbf16, #tpu.memory_space<vmem>>, vector<32x32xbf16>
    %cst = arith.constant dense<0.000000e+00> : vector<32x128xf32>
    %3 = tpu.matmul %2, %1, %cst {dimension_numbers = #tpu.dot_dimension_numbers<[1], [1], [0], [0], [0, 0, 1, 0], [], []>} : vector<32x32xbf16>, vector<128x32xbf16>, vector<32x128xf32> -> vector<32x128xf32>
    %c0_3 = arith.constant 0 : index
    %c0_4 = arith.constant 0 : index
    %4 = vector.load %arg3[%c0_3, %c0_4] : memref<32x1xf32, #tpu.memory_space<vmem>>, vector<32x1xf32>
    %5 = vector.broadcast %4 : vector<32x1xf32> to vector<32x128xf32>
    %6 = arith.addf %3, %5 : vector<32x128xf32>
    %7 = math.tanh %6 : vector<32x128xf32>
    %c0_5 = arith.constant 0 : index
    %c0_6 = arith.constant 0 : index
    %8 = vector.load %arg4[%c0_5, %c0_6] : memref<32x32xbf16, #tpu.memory_space<vmem>>, vector<32x32xbf16>
    %9 = arith.truncf %7 : vector<32x128xf32> to vector<32x128xbf16>
    %cst_7 = arith.constant dense<0.000000e+00> : vector<32x128xf32>
    %10 = tpu.matmul %8, %9, %cst_7 {dimension_numbers = #tpu.dot_dimension_numbers<[1], [0], [0], [1], [0, 0, 1, 1], [], []>} : vector<32x32xbf16>, vector<32x128xbf16>, vector<32x128xf32> -> vector<32x128xf32>
    %c0_8 = arith.constant 0 : index
    %c0_9 = arith.constant 0 : index
    %11 = vector.load %arg5[%c0_8, %c0_9] : memref<32x1xf32, #tpu.memory_space<vmem>>, vector<32x1xf32>
    %12 = vector.broadcast %11 : vector<32x1xf32> to vector<32x128xf32>
    %13 = arith.addf %10, %12 : vector<32x128xf32>
    %14 = math.tanh %13 : vector<32x128xf32>
    %c0_10 = arith.constant 0 : index
    %c0_11 = arith.constant 0 : index
    %15 = vector.load %arg6[%c0_10, %c0_11] : memref<32x1xf32, #tpu.memory_space<vmem>>, vector<32x1xf32>
    %16 = vector.broadcast %15 : vector<32x1xf32> to vector<32x128xf32>
    %17 = arith.mulf %14, %16 : vector<32x128xf32>
    %cst_12 = arith.constant dense<0.000000e+00> : vector<128xf32>
    %18 = vector.multi_reduction <add>, %17, %cst_12 [0] : vector<32x128xf32> to vector<128xf32>
    %19 = vector.shape_cast %18 : vector<128xf32> to vector<1x128xf32>
    %c0_13 = arith.constant 0 : index
    %c0_14 = arith.constant 0 : index
    %20 = memref.load %arg7[%c0_13, %c0_14] : memref<1x1xf32, #tpu.memory_space<smem>>
    %21 = vector.broadcast %20 : f32 to vector<1x128xf32>
    %22 = arith.addf %19, %21 : vector<1x128xf32>
    %c0_15 = arith.constant 0 : index
    %c0_16 = arith.constant 0 : index
    %c0_17 = arith.constant 0 : index
    %23 = vector.load %arg8[%c0_15, %c0_16, %c0_17] : memref<1x1x128xf32, #tpu.memory_space<vmem>>, vector<1x1x128xf32>
    %24 = vector.shape_cast %23 : vector<1x1x128xf32> to vector<1x128xf32>
    %25 = vector.shape_cast %22 : vector<1x128xf32> to vector<1x1x128xf32>
    tpu.vector_store %arg8[%c0_15, %c0_16, %c0_17], %25 {strides = array<i32>} : memref<1x1x128xf32, #tpu.memory_space<vmem>>, vector<1x1x128xf32>,
    return
  }
  func.func @transform_0(%arg0: i32) -> (i32, i32) {
    %c0_i32 = arith.constant 0 : i32
    %c0_i32_0 = arith.constant 0 : i32
    return %arg0, %c0_i32 : i32, i32
  }
  func.func @transform_1(%arg0: i32) -> (i32, i32) {
    %c0_i32 = arith.constant 0 : i32
    %c0_i32_0 = arith.constant 0 : i32
    %c0_i32_1 = arith.constant 0 : i32
    return %c0_i32, %c0_i32_0 : i32, i32
  }
  func.func @transform_2(%arg0: i32) -> (i32, i32) {
    %c0_i32 = arith.constant 0 : i32
    %c0_i32_0 = arith.constant 0 : i32
    %c0_i32_1 = arith.constant 0 : i32
    return %c0_i32, %c0_i32_0 : i32, i32
  }
  func.func @transform_3(%arg0: i32) -> (i32, i32) {
    %c0_i32 = arith.constant 0 : i32
    %c0_i32_0 = arith.constant 0 : i32
    %c0_i32_1 = arith.constant 0 : i32
    return %c0_i32, %c0_i32_0 : i32, i32
  }
  func.func @transform_4(%arg0: i32) -> (i32, i32) {
    %c0_i32 = arith.constant 0 : i32
    %c0_i32_0 = arith.constant 0 : i32
    %c0_i32_1 = arith.constant 0 : i32
    return %c0_i32, %c0_i32_0 : i32, i32
  }
  func.func @transform_5(%arg0: i32) -> (i32, i32) {
    %c0_i32 = arith.constant 0 : i32
    %c0_i32_0 = arith.constant 0 : i32
    %c0_i32_1 = arith.constant 0 : i32
    return %c0_i32, %c0_i32_0 : i32, i32
  }
  func.func @transform_6(%arg0: i32) -> (i32, i32) {
    %c0_i32 = arith.constant 0 : i32
    %c0_i32_0 = arith.constant 0 : i32
    %c0_i32_1 = arith.constant 0 : i32
    return %c0_i32, %c0_i32_0 : i32, i32
  }
  func.func @transform_7(%arg0: i32) -> (i32, i32, i32) {
    %c0_i32 = arith.constant 0 : i32
    %c0_i32_0 = arith.constant 0 : i32
    %c0_i32_1 = arith.constant 0 : i32
    return %arg0, %c0_i32, %c0_i32_0 : i32, i32, i32
  }
}

</mosaic_0001>

<bundles_post_ra>
// kernel: classifier_forward.1
= control target key start
LH: loop header
LB: loop body
LE: loop exit
PB: predicated region body
PF: predicated region fallthrough
CT: control target
= control target key end

     0   :  { %s1057_s0 = inlined_call_operand.vmem [shape: f32[256,32], index: 0, kind: input, shape index: {}]   ;;  %s1058_s1 = inlined_call_operand.vmem [shape: bf16[32,32], index: 1, kind: input, shape index: {}]   ;;  %s1059_s2 = inlined_call_operand.vmem [shape: f32[32,1], index: 2, kind: input, shape index: {}]   ;;  %s1060_s3 = inlined_call_operand.vmem [shape: bf16[32,32], index: 3, kind: input, shape index: {}]   ;;  %s1061_s4 = inlined_call_operand.vmem [shape: f32[32,1], index: 4, kind: input, shape index: {}]   ;;  %s1062_s5 = inlined_call_operand.vmem [shape: f32[32,1], index: 5, kind: input, shape index: {}]   ;;  %s1063_s6 = inlined_call_operand.<no memory space> [shape: f32[1,1], index: 6, kind: input, shape index: {}]   ;;  %s1064_s7 = inlined_call_operand.hbm [shape: f32[2,1,128], index: 7, kind: output, shape index: {}]  }
   0x1   :  { %12 = sst [smem:[#allocation2]] %s1063_s6 }
   0x2   :  { %13 = vsyncpa [#allocation4], 0 }
   0x3   :  { %15 = vsyncpa [#allocation4 + $0x1], 0  ;;  %s872_s26 = smov 0   ;;  %s874_s27 = smov 0  }
   0x4   :  { %s876_s28 = smov 0   ;;  %s878_s29 = smov 0  }
   0x5 LB: > { %s633_s6 = sadd.s32 4294967295, %s825_s29   ;;  %s634_s30 = sadd.s32 4294967294, %s825_s29   ;;  %s825_s29 = sphi %s878_s29, %s1070_s29   ;;  %s821_s28 = sphi %s876_s28, %s1069_s28   ;;  %s817_s27 = sphi %s874_s27, %s1068_s27   ;;  %s813_s26 = sphi %s872_s26, %s1067_s26  }
   0x6   : > { %s895_s8 = sadd.s32 1, %s825_s29   ;;  %s180_s9 = sadd.s32 1, %s821_s28 }
   0x7   : > { %s177_s10 = ssub.s32 %s825_s29, %s895_s8  ;;  %p190_p0 = scmp.ne.s32.totalorder %s821_s28, %s817_s27 }
   0x8   : > { %p178_p1 = scmp.eq.s32.totalorder %s177_s10, 0  ;;  %p191_p2 = scmp.eq.s32.totalorder %s633_s6, 1 }
   0x9   : > { %p196_p3 = scmp.ne.s32.totalorder %s817_s27, %s813_s26  ;;  %p197_p4 = scmp.eq.s32.totalorder %s634_s30, 1 }
   0xa   : > { %s905_s11 = scalar_select %p178_p1, %s821_s28, %s180_s9  }
   0xb   : > { %p907_p5 = por %p191_p2, %p190_p0  ;;  %p911_p6 = por %p197_p4, %p196_p3 }
   0xc   : > { %p637_p7 = scmp.ge.s32.totalorder %s825_s29, 1  ;;  %p242_p8 = scmp.lt.s32.totalorder %s825_s29, 3 }
   0xe   : > { %p243_p9 = pnand %p637_p7, %p242_p8 }
   0xf   : > { %s917_s14 = sshll.u32 (!%p243_p9), %s633_s6, 4  ;;  %v743_v0 = vld [vmem:[%s1058_s1] sm:$0xff] (!%p243_p9)   ;;  %vm342_vm0 = vcmask (!%p243_p9), 261120   ;;  %v310_v2 = vld [vmem:[%s1059_s2 + $0x10] sm:$0xff] (!%p243_p9)  ;;  %v827_v3 = vmov (!%p243_p9), 0   ;;  %v309_v4 = vld [vmem:[%s1059_s2 + $0x8] sm:$0xff] (!%p243_p9) }
  0x10   : > { %246 = sbr.rel (%p243_p9) target bundleno = 596 (0x254), region = 48  ;;  %p274_p10 = scmp.lt.s32.totalorder (!%p243_p9), %s917_s14, 31  ;;  %v308_v1 = vld [vmem:[%s1059_s2] sm:$0xff] (!%p243_p9)  ;;  %681 = vmatprep.mubr.msk.bf16.mxu0 (!%p243_p9), %vm342_vm0, %v743_v0  ;;  %741 = vset.pattern.permute.xlu0 (!%p243_p9), %v827_v3  ;;  %v311_v5 = vld [vmem:[%s1059_s2 + $0x18] sm:$0xff] (!%p243_p9)  ;;  %v433_v14 = vld [vmem:[%s1061_s4 + $0x8] sm:$0xff] (!%p243_p9) }
  0x11   : > { %314 = vperm.xlu0 (!%p243_p9), %741, %v308_v1   ;;  %742 = vset.pattern.permute.xlu1 (!%p243_p9), %v827_v3  ;;  %v432_v12 = vld [vmem:[%s1061_s4] sm:$0xff] (!%p243_p9)  ;;  %v434_v17 = vld [vmem:[%s1061_s4 + $0x10] sm:$0xff] (!%p243_p9)  ;;  %v435_v18 = vld [vmem:[%s1061_s4 + $0x18] sm:$0xff] (!%p243_p9)  ;;  %s271_s23 = sand.u32 (!%p243_p9), 1, %s817_s27   ;;  %s1015_s10 = scalar_lea.hbm (!%p243_p9), %s1064_s7, %s917_s14 }
  0x12   : > { %324 = vperm.xlu1 (!%p243_p9), %742, %v310_v2   ;;  %v525_v21 = vld [vmem:[%s1062_s5] sm:$0xff] (!%p243_p9)  ;;  %v526_v22 = vld [vmem:[%s1062_s5 + $0x8] sm:$0xff] (!%p243_p9)  ;;  %v527_v25 = vld [vmem:[%s1062_s5 + $0x10] sm:$0xff] (!%p243_p9)  ;;  %s272_s24 = scalar_lea.vmem (!%p243_p9), [#allocation3], %s271_s23  ;;  %s567_s15 = scalar_lea.sflag (!%p243_p9), [#allocation4], %s271_s23 }
  0x13   : > { %v528_v26 = vld [vmem:[%s1062_s5 + $0x18] sm:$0xff] (!%p243_p9)  ;;  %v744_v46 = vld [vmem:[%s1058_s1 + $0x8] sm:$0xff] (!%p243_p9)   ;;  %v745_v47 = vld [vmem:[%s1060_s3] sm:$0xff] (!%p243_p9)   ;;  %s579_s25 = sshll.u32 (!%p243_p9), %s272_s24, 4  ;;  %s828_s17 = smov (!%p243_p9), [#allocation3]   ;;  %s1017_s25 = int_to_ptr.vmem [resolvable:$true] %s579_s25 }
  0x14   : > { %689 = vmatprep.mubr.msk.bf16.mxu1 (!%p243_p9), %vm342_vm0, %v745_v47  ;;  %v746_v2 = vld [vmem:[%s1060_s3 + $0x8] sm:$0xff] (!%p243_p9)   ;;  %s763_s16 = scalar_lea.vmem (!%p243_p9), %s1017_s25, 16  ;;  %s767_s18 = sshll.u32 (!%p243_p9), %s828_s17, 4  ;;  %s768_s18 = int_to_ptr.vmem [resolvable:$false] %s767_s18 }
  0x15   : > { %319 = vperm.xlu0 (!%p243_p9), %741, %v309_v4   ;;  %p764_p11 = scmp.ne.s32.totalorder (!%p243_p9), %s1017_s25, %s763_s16  ;;  %s769_s19 = scalar_lea.vmem (!%p243_p9), %s768_s18, 32 }
  0x16   : > { %329 = vperm.xlu1 (!%p243_p9), %742, %v311_v5   ;;  %p770_p0 = scmp.lt.s32.totalorder (!%p243_p9), %s1017_s25, %s768_s18  ;;  %p771_p1 = scmp.lt.s32.totalorder (!%p243_p9), %s769_s19, %s763_s16 }
  0x17   : > { %s275_s21 = scalar_select %p274_p10, %s917_s14, 31 }
  0x18   : > { %p765_p12 = pnand %p764_p11, %p907_p5  ;;  %p772_p2 = por %p771_p1, %p770_p0 }
  0x19   : > { %s639_s22 = sshll.u32 %s275_s21, 3  ;;  %438 = vperm.xlu0 %741, %v432_v12  }
  0x1a   : > { %s937_s30 = scalar_lea.vmem %s1057_s0, %s639_s22  ;;  %443 = vperm.xlu1 %742, %v433_v14   ;;  %s562_s22 = sld [smem:[#allocation2]] }
  0x1b   : > { %v280_v6 = vld [vmem:[%s937_s30] sm:$0xff]  ;;  %v281_v7 = vld [vmem:[%s937_s30 + $0x8] sm:$0xff]  ;;  %v282_v8 = vld [vmem:[%s937_s30 + $0x10] sm:$0xff]  ;;  %p766_p13 = pneg %p765_p12 }
  0x1c   : > { %v296_v9 = vpack.c.bf16 %v281_v7, %v280_v6  ;;  %v283_v10 = vld [vmem:[%s937_s30 + $0x18] sm:$0xff]  ;;  %v284_v15 = vld [vmem:[%s937_s30 + $0x20] sm:$0xff]  ;;  %v285_v16 = vld [vmem:[%s937_s30 + $0x28] sm:$0xff] }
  0x1d   : > { %v297_v11 = vpack.c.bf16 %v283_v10, %v282_v8  ;;  %v298_v20 = vpack.c.bf16 %v285_v16, %v284_v15  ;;  %448 = vperm.xlu0 %741, %v434_v17   ;;  %v286_v23 = vld [vmem:[%s937_s30 + $0x30] sm:$0xff]  ;;  %v287_v24 = vld [vmem:[%s937_s30 + $0x38] sm:$0xff]  ;;  %v288_v29 = vld [vmem:[%s937_s30 + $0x40] sm:$0xff]  ;;  %p773_p3 = pnand %p772_p2, %p766_p13 }
  0x1e   : > { %693 = vmatprep.subr.msk.bf16.mxu0 %vm342_vm0, %v296_v9  ;;  %v350_v13 = vsel %vm342_vm0, %v296_v9, 0  ;;  %453 = vperm.xlu1 %742, %v435_v18   ;;  %v299_v28 = vpack.c.bf16 %v287_v24, %v286_v23  ;;  %v289_v30 = vld [vmem:[%s937_s30 + $0x48] sm:$0xff]  ;;  %v290_v33 = vld [vmem:[%s937_s30 + $0x50] sm:$0xff]  ;;  %v291_v34 = vld [vmem:[%s937_s30 + $0x58] sm:$0xff] }
  0x1f   : > { %666 = vmatpush3.bf16.xpose.msra.mxu0 %v350_v13  ;;  %v353_v19 = vsel %vm342_vm0, %v297_v11, 0  ;;  %v356_v27 = vsel %vm342_vm0, %v298_v20, 0  ;;  %v300_v32 = vpack.c.bf16 %v289_v30, %v288_v29  ;;  %v301_v36 = vpack.c.bf16 %v291_v34, %v290_v33  ;;  %v292_v37 = vld [vmem:[%s937_s30 + $0x60] sm:$0xff]  ;;  %v293_v38 = vld [vmem:[%s937_s30 + $0x68] sm:$0xff]  ;;  %v294_v41 = vld [vmem:[%s937_s30 + $0x70] sm:$0xff] }
  0x20   : > { %694 = vmatprep.subr.msk.bf16.mxu0 %vm342_vm0, %v297_v11  ;;  %v359_v31 = vsel %vm342_vm0, %v299_v28, 0  ;;  %v302_v40 = vpack.c.bf16 %v293_v38, %v292_v37  ;;  %v295_v42 = vld [vmem:[%s937_s30 + $0x78] sm:$0xff] }
  0x21   : > { %531 = vperm.xlu0 %741, %v525_v21   ;;  %v362_v35 = vsel %vm342_vm0, %v300_v32, 0  ;;  %v365_v39 = vsel %vm342_vm0, %v301_v36, 0  ;;  %v303_v44 = vpack.c.bf16 %v295_v42, %v294_v41 }
  0x22   : > { %536 = vperm.xlu1 %742, %v526_v22   ;;  %v368_v43 = vsel %vm342_vm0, %v302_v40, 0 }
  0x23   : > { %v371_v45 = vsel %vm342_vm0, %v303_v44, 0 }
  0x25   : > { %541 = vperm.xlu0 %741, %v527_v25  }
  0x26   : > { %546 = vperm.xlu1 %742, %v528_v26  }
  0x27   : > { %668 = vmatpush3.bf16.xpose.msra.mxu0 %v353_v19 }
  0x28   : > { %695 = vmatprep.subr.msk.bf16.mxu0 %vm342_vm0, %v298_v20 }
  0x2f   : > { %670 = vmatpush3.bf16.xpose.msra.mxu0 %v356_v27 }
  0x30   : > { %696 = vmatprep.subr.msk.bf16.mxu0 %vm342_vm0, %v299_v28 }
  0x37   : > { %672 = vmatpush3.bf16.xpose.msra.mxu0 %v359_v31 }
  0x38   : > { %697 = vmatprep.subr.msk.bf16.mxu0 %vm342_vm0, %v300_v32 }
  0x3f   : > { %674 = vmatpush3.bf16.xpose.msra.mxu0 %v362_v35  ;;  %v563_v35 = vstv %s562_s22 }
  0x40   : > { %698 = vmatprep.subr.msk.bf16.mxu0 %vm342_vm0, %v301_v36 }
  0x47   : > { %676 = vmatpush3.bf16.xpose.msra.mxu0 %v365_v39 }
  0x48   : > { %699 = vmatprep.subr.msk.bf16.mxu0 %vm342_vm0, %v302_v40 }
  0x4f   : > { %678 = vmatpush3.bf16.xpose.msra.mxu0 %v368_v43 }
  0x50   : > { %700 = vmatprep.subr.msk.bf16.mxu0 %vm342_vm0, %v303_v44 }
  0x57   : > { %680 = vmatpush3.bf16.xpose.msra.mxu0 %v371_v45 }
  0x5e   : > { %682 = vmatmul.mubr.msk.bf16.vlgmr.msra.gmra.mrb[0].mxu0 %vm342_vm0, %v744_v46 }
  0x90   : > { %v315_v49 = vpop.permute.xlu0 %314 }
  0x91   : > { %v325_v48 = vpop.permute.xlu1 %324 }
  0x94   : > { %v320_v56 = vpop.permute.xlu0 %319 }
  0x95   : > { %v330_v53 = vpop.permute.xlu1 %329 }
  0x98   : > { %v439_v3 = vpop.permute.xlu0 %438 }
  0x99   : > { %v444_v4 = vpop.permute.xlu1 %443 }
  0x9c   : > { %v449_v5 = vpop.permute.xlu0 %448 }
  0x9d   : > { %v454_v11 = vpop.permute.xlu1 %453 }
  0xa0   : > { %v532_v15 = vpop.permute.xlu0 %531 }
  0xa1   : > { %v537_v17 = vpop.permute.xlu1 %536 }
  0xa4   : > { %v542_v23 = vpop.permute.xlu0 %541 }
  0xa5   : > { %v547_v26 = vpop.permute.xlu1 %546 }
 0x131   : > { %v683_v50 = vpop.f32.mrb[0].mxu0 }
 0x132   : > { %v416_v51 = vadd.f32 %v683_v50, %v325_v48  ;;  %v407_v52 = vpop.f32.mrb[1].mxu0 }
 0x133   : > { %v408_v54 = vadd.f32 %v407_v52, %v315_v49  ;;  %v684_v55 = vpop.f32.mrb[2].mxu0 }
 0x134   : > { %747 = vtanh.f32 %v416_v51  ;;  %v419_v57 = vadd.f32 %v684_v55, %v330_v53  ;;  %v410_v58 = vpop.f32.mrb[3].mxu0 }
 0x135   : > { %749 = vtanh.f32 %v408_v54  ;;  %v411_v59 = vadd.f32 %v410_v58, %v320_v56 }
 0x136   : > { %751 = vtanh.f32 %v419_v57 }
 0x137   : > { %753 = vtanh.f32 %v411_v59 }
 0x13e   : > { %v748_v60 = vpop.eup %747 }
 0x13f   : > { %v750_v61 = vpop.eup %749 }
 0x140   : > { %v752_v62 = vpop.eup %751 }
 0x141   : > { %v754_v63 = vpop.eup %753  ;;  %v431_v0 = vpack.c.bf16 %v752_v62, %v748_v60 }
 0x142   : > { %v430_v1 = vpack.c.bf16 %v754_v63, %v750_v61 }
 0x144   : > { %685 = vmatprep.subr.bf16.mxu1 %v430_v1 }
 0x145   : > { %686 = vmatpush3.bf16.msra.mxu1 %v430_v1 }
 0x146   : > { %687 = vmatprep.subr.bf16.mxu1 %v431_v0 }
 0x149   : > { %688 = vmatpush3.bf16.msra.mxu1 %v431_v0 }
 0x14c   : > { %690 = vmatmul.mubr.msk.bf16.vlgmr.msra.gmra.mrb[0].mxu1 %vm342_vm0, %v746_v2 }
 0x21f   : > { %v691_v6 = vpop.f32.mrb[0].mxu1 }
 0x220   : > { %v515_v7 = vadd.f32 %v691_v6, %v449_v5  ;;  %v506_v8 = vpop.f32.mrb[1].mxu1 }
 0x221   : > { %v507_v9 = vadd.f32 %v506_v8, %v439_v3  ;;  %v692_v10 = vpop.f32.mrb[2].mxu1 }
 0x222   : > { %v509_v12 = vpop.f32.mrb[3].mxu1  ;;  %v518_v13 = vadd.f32 %v692_v10, %v454_v11 }
 0x223   : > { %755 = vtanh.f32 %v507_v9  ;;  %v510_v14 = vadd.f32 %v509_v12, %v444_v4 }
 0x224   : > { %757 = vtanh.f32 %v515_v7 }
 0x225   : > { %759 = vtanh.f32 %v510_v14 }
 0x226   : > { %761 = vtanh.f32 %v518_v13 }
 0x22d   : > { %v756_v16 = vpop.eup %755 }
 0x22e   : > { %v758_v18 = vpop.eup %757  ;;  %v549_v20 = vmul.f32 %v756_v16, %v532_v15 }
 0x22f   : > { %v760_v19 = vpop.eup %759  ;;  %v551_v24 = vmul.f32 %v758_v18, %v542_v23 }
 0x230   : > { %v550_v21 = vmul.f32 %v760_v19, %v537_v17  ;;  %v762_v22 = vpop.eup %761 }
 0x231   : > { %v552_v27 = vmul.f32 %v762_v22, %v547_v26 }
 0x232   : > { %v553_v25 = vadd.f32 %v550_v21, %v549_v20 }
 0x234   : > { %v554_v28 = vadd.f32 %v553_v25, %v551_v24 }
 0x236   : > { %v555_v29 = vadd.f32 %v554_v28, %v552_v27 }
 0x238   : > { %v556_v30 = vrot.slane %v555_v29, 4 }
 0x23a   : > { %v557_v31 = vadd.f32 %v556_v30, %v555_v29 }
 0x23c   : > { %v558_v32 = vrot.slane %v557_v31, 2 }
 0x23e   : > { %v559_v33 = vadd.f32 %v558_v32, %v557_v31 }
 0x240   : > { %v560_v34 = vrot.slane %v559_v33, 1 }
 0x242   : > { %v561_v36 = vadd.f32 %v560_v34, %v559_v33 }
 0x244   : > { %v564_v37 = vadd.f32 %v563_v35, %v561_v36 }
 0x246   : > { %565 = vst [vmem:[%s272_s24] sm:$0x1] %v564_v37 }
 0x247   : > { %776 = shalt.err (!%p773_p3)
}
 0x248   : > { %s777_s14 = scalar_lea.hbm %s1015_s10, 16  ;;  %s781_s21 = scalar_lea.hbm %s1064_s7, 32 }
 0x249   : > { %p778_p4 = scmp.ne.s32.totalorder %s1015_s10, %s777_s14  ;;  %p782_p9 = scmp.lt.u32.totalorder %s1015_s10, %s1064_s7 }
 0x24a   : > { %p783_p10 = scmp.lt.u32.totalorder %s781_s21, %s777_s14  ;;  %p785_p12 = scmp.lt.u32.totalorder %s777_s14, %s1015_s10 }
 0x24b   : > { %p779_p7 = pnand %p778_p4, %p907_p5 }
 0x24c   : > { %p784_p11 = por %p783_p10, %p782_p9 }
 0x24d   : > { %p780_p8 = pneg %p779_p7 }
 0x24e   : > { %p786_p13 = por %p785_p12, %p784_p11 }
 0x250   : > { %p787_p0 = pnand %p786_p13, %p780_p8 }
 0x252   : > { %790 = shalt.err (!%p787_p0)
}
 0x253   : > { %701 = dma.vmem_to_hbm [thread:$0]  (%p907_p5), %s1017_s25, 16, %s1015_s10, %s567_s15  }
 0x254 PF: > { %p707_p1 = scmp.ge.s32.totalorder %s825_s29, 2  ;;  %s591_s24 = sand.u32 1, %s813_s26  }
 0x255   : > { %s592_s6 = scalar_lea.sflag [#allocation4], %s591_s24 }
 0x256   : > { %p704_p2 = pnand %p707_p1, %p911_p6 }
 0x258   : > { %808 = dma.done.wait (!%p704_p2), %s592_s6, 16  }
 0x259   : > { %810 = vsyncadd (!%p704_p2), %s592_s6, 4294967280  ;;  %p18_p3 = scmp.ge.s32.totalorder %s895_s8, 4   ;;  %s1067_s26 = smov %s817_s27 }
 0x25a   : > { %s1068_s27 = smov %s821_s28  ;;  %s1069_s28 = smov %s905_s11 }
 0x25b   : > { %s1070_s29 = smov %s895_s8  ;;  %20 = sbr.rel (!%p18_p3) target bundleno = 5 (0x5), region = 83 }
 0x262   :  { %596 = vsyncpa [#allocation4], 1 }
 0x263   :  { %598 = vsyncpa [#allocation4 + $0x1], 1 }

</bundles_post_ra>
